<compile_context>
chip_gen: v7x
topology: tpu7x:2x2x1
jax: 0.10.0
libtpu: 0.0.40
codegen_flags: <defaults>
</compile_context>

<pallas_src>
import math

import jax
import jax.numpy as jnp
from jax.experimental import pallas as pl
from jax.experimental.pallas import tpu as pltpu


def _round_up(x, m):
    return ((x + m - 1) // m) * m


def _pad_cols(a, n):
    """Zero-pad the last axis of `a` to width n."""
    pad = n - a.shape[-1]
    if pad == 0:
        return a
    widths = [(0, 0)] * (a.ndim - 1) + [(0, pad)]
    return jnp.pad(a, widths)


def _pick_block_batch(B, S, target_rows=256):
    """Largest divisor of B whose Bt*S row count stays <= target_rows.

    Amortizes weight pushes / per-step overhead while bounding the per-step
    VMEM footprint of the (Bt, S, S) scores tile.
    """
    fitting = [d for d in range(1, B + 1) if B % d == 0 and d * S <= target_rows]
    return max(fitting) if fitting else 1


def _make_head_kernel(scale, mask_mode):
    """mask_mode in {"none", "bool", "add"}."""

    def kernel(*refs):
        if mask_mode == "none":
            (k_ref, v_ref, q_ref,
             kw_ref, kb_ref, vw_ref, vb_ref, qw_ref, qb_ref, o_ref) = refs
            mask_ref = None
        else:
            (k_ref, v_ref, q_ref,
             kw_ref, kb_ref, vw_ref, vb_ref, qw_ref, qb_ref,
             mask_ref, o_ref) = refs

        Bt, S, Dm = k_ref.shape
        Hp = o_ref.shape[-1]          # lane-dense (padded) head dim

        # --- projections: flatten (Bt, S) into the matmul M dimension -------
        k2 = k_ref[...].reshape(Bt * S, Dm)
        v2 = v_ref[...].reshape(Bt * S, Dm)
        q2 = q_ref[...].reshape(Bt * S, Dm)

        kp = (jnp.dot(k2, kw_ref[...], preferred_element_type=jnp.float32)
              + kb_ref[...]).reshape(Bt, S, Hp)
        vp = (jnp.dot(v2, vw_ref[...], preferred_element_type=jnp.float32)
              + vb_ref[...]).reshape(Bt, S, Hp)
        qp = (jnp.dot(q2, qw_ref[...], preferred_element_type=jnp.float32)
              + qb_ref[...]).reshape(Bt, S, Hp)

        # --- scaled dot-product attention ------------------------------------
        # Contract over the (padded) head dim; padded columns are zero so they
        # do not perturb the scores.  No explicit kp.T is materialized.
        scores = jnp.einsum("bqd,bkd->bqk", qp, kp,
                            preferred_element_type=jnp.float32) * scale

        if mask_mode == "bool":
            # int8 mask: nonzero = allowed, zero = masked (-inf, like PyTorch).
            scores = jnp.where(mask_ref[...] != 0, scores, -jnp.inf)
        elif mask_mode == "add":
            scores = scores + mask_ref[...].astype(jnp.float32)

        # numerically stable softmax over the key axis (f32 throughout)
        m = jnp.max(scores, axis=-1, keepdims=True)
        e = jnp.exp(scores - m)
        denom = jnp.sum(e, axis=-1, keepdims=True)
        probs = e * pl.reciprocal(denom, approx=True)

        out = jnp.einsum("bqk,bkd->bqd", probs, vp,
                         preferred_element_type=jnp.float32)
        o_ref[...] = out.astype(o_ref.dtype)

    return kernel


def head_forward(k, v, q, params, mask=None):
    """k, v, q: (B, S, model_dim). Returns (B, S, head_dim)."""
    B, S, Dm = k.shape
    Hd = params["qW"].shape[1]
    Hp = _round_up(Hd, 128)               # lane-dense output / weight columns
    scale = 1.0 / math.sqrt(Hd)

    Bt = _pick_block_batch(B, S)
    grid = (B // Bt,)

    # zero-pad projection weights / biases to the lane-dense head dim
    kW = _pad_cols(params["kW"], Hp)
    vW = _pad_cols(params["vW"], Hp)
    qW = _pad_cols(params["qW"], Hp)
    kb = _pad_cols(params["kb"].reshape(1, Hd), Hp)
    vb = _pad_cols(params["vb"].reshape(1, Hd), Hp)
    qb = _pad_cols(params["qb"].reshape(1, Hd), Hp)

    act_spec = pl.BlockSpec((Bt, S, Dm), lambda b: (b, 0, 0))
    w_spec = pl.BlockSpec((Dm, Hp), lambda b: (0, 0))
    b_spec = pl.BlockSpec((1, Hp), lambda b: (0, 0))
    out_spec = pl.BlockSpec((Bt, S, Hp), lambda b: (b, 0, 0))

    if mask is None:
        mask_mode = "none"
        mask_args = ()
        mask_specs = []
    else:
        mask_b = jnp.broadcast_to(mask, (B, S, S))
        if mask_b.dtype == jnp.bool_:
            mask_mode = "bool"
            mask_b = mask_b.astype(jnp.int8)   # 1 byte/elem HBM stream
        else:
            mask_mode = "add"
            mask_b = mask_b
        mask_args = (mask_b,)
        mask_specs = [pl.BlockSpec((Bt, S, S), lambda b: (b, 0, 0))]

    in_specs = [act_spec, act_spec, act_spec,
                w_spec, b_spec, w_spec, b_spec, w_spec, b_spec] + mask_specs

    out_padded = pl.pallas_call(
        _make_head_kernel(scale, mask_mode),
        out_shape=jax.ShapeDtypeStruct((B, S, Hp), k.dtype),
        grid_spec=pltpu.PrefetchScalarGridSpec(
            num_scalar_prefetch=0,
            grid=grid,
            in_specs=in_specs,
            out_specs=out_spec,
        ),
        compiler_params=pltpu.CompilerParams(
            dimension_semantics=("parallel",)),
    )(k, v, q, kW, kb, vW, vb, qW, qb, *mask_args)

    return out_padded[:, :, :Hd]


def init_params(key, model_dim, head_dim):
    ks = jax.random.split(key, 6)
    bound = 1.0 / math.sqrt(model_dim)  # matches nn.Linear default init range
    u = lambda kk, shape: jax.random.uniform(kk, shape, jnp.float32, -bound, bound)
    return {
        "kW": u(ks[0], (model_dim, head_dim)), "kb": u(ks[1], (head_dim,)),
        "vW": u(ks[2], (model_dim, head_dim)), "vb": u(ks[3], (head_dim,)),
        "qW": u(ks[4], (model_dim, head_dim)), "qb": u(ks[5], (head_dim,)),
    }


def _reference(k, v, q, params, mask=None):
    Hd = params["qW"].shape[1]
    kp = k @ params["kW"] + params["kb"]
    vp = v @ params["vW"] + params["vb"]
    qp = q @ params["qW"] + params["qb"]
    scores = jnp.einsum("bqd,bkd->bqk", qp, kp) / math.sqrt(Hd)
    if mask is not None:
        mask = jnp.broadcast_to(mask, scores.shape)
        if mask.dtype == jnp.bool_:
            scores = jnp.where(mask, scores, -jnp.inf)
        else:
            scores = scores + mask
    probs = jax.nn.softmax(scores, axis=-1)
    return jnp.einsum("bqk,bkd->bqd", probs, vp)


if __name__ == "__main__":
    # config: model_dim=32, no_heads=4 -> head_dim=8; train_mode=False -> dropout=0
    B, S, Dm, n_heads = 2, 8, 32, 4
    Hd = Dm // n_heads

    key = jax.random.PRNGKey(0)
    kp_key, kk, kv, kq = jax.random.split(key, 4)
    params = init_params(kp_key, Dm, Hd)

    k = jax.random.normal(kk, (B, S, Dm), jnp.float32)
    v = jax.random.normal(kv, (B, S, Dm), jnp.float32)
    q = jax.random.normal(kq, (B, S, Dm), jnp.float32)

    # no-mask path (mask input is skipped entirely in this compile variant)
    out = jax.block_until_ready(head_forward(k, v, q, params, mask=None))
    ref = _reference(k, v, q, params, mask=None)
    assert out.shape == (B, S, Hd)
    # tolerance accounts for the EUP approximate reciprocal in the softmax
    assert jnp.allclose(out, ref, atol=2e-3, rtol=2e-3)

    # boolean (causal) mask path: carried as int8, expanded in-kernel
    causal = jnp.tril(jnp.ones((S, S), jnp.bool_))
    out_m = jax.block_until_ready(head_forward(k, v, q, params, mask=causal))
    ref_m = _reference(k, v, q, params, mask=causal)
    assert out_m.shape == (B, S, Hd)
    assert jnp.allclose(out_m, ref_m, atol=2e-3, rtol=2e-3)

    print("KERNEL_OK")
</pallas_src>

<mosaic_0001>
module attributes {stable_mosaic.version = 11 : i64} {
  func.func @kernel(%arg0: i32, %arg1: memref<2x8x32xf32, #tpu.memory_space<vmem>>, %arg2: memref<2x8x32xf32, #tpu.memory_space<vmem>>, %arg3: memref<2x8x32xf32, #tpu.memory_space<vmem>>, %arg4: memref<32x128xf32, #tpu.memory_space<vmem>>, %arg5: memref<1x128xf32, #tpu.memory_space<vmem>>, %arg6: memref<32x128xf32, #tpu.memory_space<vmem>>, %arg7: memref<1x128xf32, #tpu.memory_space<vmem>>, %arg8: memref<32x128xf32, #tpu.memory_space<vmem>>, %arg9: memref<1x128xf32, #tpu.memory_space<vmem>>, %arg10: memref<2x8x128xf32, #tpu.memory_space<vmem>>) attributes {dimension_semantics = [#tpu.dimension_semantics<parallel>], iteration_bounds = array<i64: 1>, scalar_prefetch = 0 : i64, scratch_operands = 0 : i64, tpu.core_type = #tpu.core_type<tc>, window_params = [{transform_indices = @transform_0, window_bounds = array<i64: 2, 8, 32>}, {transform_indices = @transform_1, window_bounds = array<i64: 2, 8, 32>}, {transform_indices = @transform_2, window_bounds = array<i64: 2, 8, 32>}, {pipeline_mode = #tpu.pipeline_mode<synchronous>, transform_indices = @transform_3, window_bounds = array<i64: 32, 128>}, {pipeline_mode = #tpu.pipeline_mode<synchronous>, transform_indices = @transform_4, window_bounds = array<i64: 1, 128>}, {pipeline_mode = #tpu.pipeline_mode<synchronous>, transform_indices = @transform_5, window_bounds = array<i64: 32, 128>}, {pipeline_mode = #tpu.pipeline_mode<synchronous>, transform_indices = @transform_6, window_bounds = array<i64: 1, 128>}, {pipeline_mode = #tpu.pipeline_mode<synchronous>, transform_indices = @transform_7, window_bounds = array<i64: 32, 128>}, {pipeline_mode = #tpu.pipeline_mode<synchronous>, transform_indices = @transform_8, window_bounds = array<i64: 1, 128>}, {transform_indices = @transform_9, window_bounds = array<i64: 2, 8, 128>}]} {
    %c0 = arith.constant 0 : index
    %c0_0 = arith.constant 0 : index
    %c0_1 = arith.constant 0 : index
    %0 = vector.load %arg1[%c0, %c0_0, %c0_1] : memref<2x8x32xf32, #tpu.memory_space<vmem>>, vector<2x8x32xf32>
    %1 = vector.shape_cast %0 : vector<2x8x32xf32> to vector<16x32xf32>
    %c0_2 = arith.constant 0 : index
    %c0_3 = arith.constant 0 : index
    %c0_4 = arith.constant 0 : index
    %2 = vector.load %arg2[%c0_2, %c0_3, %c0_4] : memref<2x8x32xf32, #tpu.memory_space<vmem>>, vector<2x8x32xf32>
    %3 = vector.shape_cast %2 : vector<2x8x32xf32> to vector<16x32xf32>
    %c0_5 = arith.constant 0 : index
    %c0_6 = arith.constant 0 : index
    %c0_7 = arith.constant 0 : index
    %4 = vector.load %arg3[%c0_5, %c0_6, %c0_7] : memref<2x8x32xf32, #tpu.memory_space<vmem>>, vector<2x8x32xf32>
    %5 = vector.shape_cast %4 : vector<2x8x32xf32> to vector<16x32xf32>
    %c0_8 = arith.constant 0 : index
    %c0_9 = arith.constant 0 : index
    %6 = vector.load %arg4[%c0_8, %c0_9] : memref<32x128xf32, #tpu.memory_space<vmem>>, vector<32x128xf32>
    %cst = arith.constant dense<0.000000e+00> : vector<16x128xf32>
    %7 = tpu.matmul %1, %6, %cst {dimension_numbers = #tpu.dot_dimension_numbers<[1], [0], [0], [1], [0, 0, 1, 1], [], []>} : vector<16x32xf32>, vector<32x128xf32>, vector<16x128xf32> -> vector<16x128xf32>
    %c0_10 = arith.constant 0 : index
    %c0_11 = arith.constant 0 : index
    %8 = vector.load %arg5[%c0_10, %c0_11] : memref<1x128xf32, #tpu.memory_space<vmem>>, vector<1x128xf32>
    %9 = vector.broadcast %8 : vector<1x128xf32> to vector<16x128xf32>
    %10 = arith.addf %7, %9 : vector<16x128xf32>
    %11 = vector.shape_cast %10 : vector<16x128xf32> to vector<2x8x128xf32>
    %c0_12 = arith.constant 0 : index
    %c0_13 = arith.constant 0 : index
    %12 = vector.load %arg6[%c0_12, %c0_13] : memref<32x128xf32, #tpu.memory_space<vmem>>, vector<32x128xf32>
    %cst_14 = arith.constant dense<0.000000e+00> : vector<16x128xf32>
    %13 = tpu.matmul %3, %12, %cst_14 {dimension_numbers = #tpu.dot_dimension_numbers<[1], [0], [0], [1], [0, 0, 1, 1], [], []>} : vector<16x32xf32>, vector<32x128xf32>, vector<16x128xf32> -> vector<16x128xf32>
    %c0_15 = arith.constant 0 : index
    %c0_16 = arith.constant 0 : index
    %14 = vector.load %arg7[%c0_15, %c0_16] : memref<1x128xf32, #tpu.memory_space<vmem>>, vector<1x128xf32>
    %15 = vector.broadcast %14 : vector<1x128xf32> to vector<16x128xf32>
    %16 = arith.addf %13, %15 : vector<16x128xf32>
    %17 = vector.shape_cast %16 : vector<16x128xf32> to vector<2x8x128xf32>
    %c0_17 = arith.constant 0 : index
    %c0_18 = arith.constant 0 : index
    %18 = vector.load %arg8[%c0_17, %c0_18] : memref<32x128xf32, #tpu.memory_space<vmem>>, vector<32x128xf32>
    %cst_19 = arith.constant dense<0.000000e+00> : vector<16x128xf32>
    %19 = tpu.matmul %5, %18, %cst_19 {dimension_numbers = #tpu.dot_dimension_numbers<[1], [0], [0], [1], [0, 0, 1, 1], [], []>} : vector<16x32xf32>, vector<32x128xf32>, vector<16x128xf32> -> vector<16x128xf32>
    %c0_20 = arith.constant 0 : index
    %c0_21 = arith.constant 0 : index
    %20 = vector.load %arg9[%c0_20, %c0_21] : memref<1x128xf32, #tpu.memory_space<vmem>>, vector<1x128xf32>
    %21 = vector.broadcast %20 : vector<1x128xf32> to vector<16x128xf32>
    %22 = arith.addf %19, %21 : vector<16x128xf32>
    %23 = vector.shape_cast %22 : vector<16x128xf32> to vector<2x8x128xf32>
    "tpu.trace_start"() <{level = 10 : i32, message = "bqd,bkd->bqk"}> : () -> ()
    %cst_22 = arith.constant dense<0.000000e+00> : vector<2x8x8xf32>
    %24 = tpu.matmul %23, %11, %cst_22 {dimension_numbers = #tpu.dot_dimension_numbers<[2], [2], [1], [1], [0, 0, 0, 1, 1, 1], [0], [0]>} : vector<2x8x128xf32>, vector<2x8x128xf32>, vector<2x8x8xf32> -> vector<2x8x8xf32>
    "tpu.trace_stop"() : () -> ()
    %cst_23 = arith.constant 0.353553385 : f32
    %25 = vector.broadcast %cst_23 : f32 to vector<2x8x8xf32>
    %26 = arith.mulf %24, %25 : vector<2x8x8xf32>
    %cst_24 = arith.constant dense<0xFF800000> : vector<2x8xf32>
    %27 = vector.multi_reduction <maximumf>, %26, %cst_24 [2] : vector<2x8x8xf32> to vector<2x8xf32>
    %28 = vector.shape_cast %27 : vector<2x8xf32> to vector<2x8x1xf32>
    %29 = vector.broadcast %28 : vector<2x8x1xf32> to vector<2x8x8xf32>
    %30 = arith.subf %26, %29 : vector<2x8x8xf32>
    %31 = math.exp %30 : vector<2x8x8xf32>
    %cst_25 = arith.constant dense<0.000000e+00> : vector<2x8xf32>
    %32 = vector.multi_reduction <add>, %31, %cst_25 [2] : vector<2x8x8xf32> to vector<2x8xf32>
    %33 = vector.shape_cast %32 : vector<2x8xf32> to vector<2x8x1xf32>
    %34 = tpu.reciprocal %33 {approx = true} : vector<2x8x1xf32> -> vector<2x8x1xf32>
    %35 = vector.broadcast %34 : vector<2x8x1xf32> to vector<2x8x8xf32>
    %36 = arith.mulf %31, %35 : vector<2x8x8xf32>
    "tpu.trace_start"() <{level = 10 : i32, message = "bqk,bkd->bqd"}> : () -> ()
    %cst_26 = arith.constant dense<0.000000e+00> : vector<2x8x128xf32>
    %37 = tpu.matmul %36, %17, %cst_26 {dimension_numbers = #tpu.dot_dimension_numbers<[2], [1], [1], [2], [0, 0, 0, 1, 1, 2], [0], [0]>} : vector<2x8x8xf32>, vector<2x8x128xf32>, vector<2x8x128xf32> -> vector<2x8x128xf32>
    "tpu.trace_stop"() : () -> ()
    %c0_27 = arith.constant 0 : index
    %c0_28 = arith.constant 0 : index
    %c0_29 = arith.constant 0 : index
    %38 = vector.load %arg10[%c0_27, %c0_28, %c0_29] : memref<2x8x128xf32, #tpu.memory_space<vmem>>, vector<2x8x128xf32>
    tpu.vector_store %arg10[%c0_27, %c0_28, %c0_29], %37 {strides = array<i32>} : memref<2x8x128xf32, #tpu.memory_space<vmem>>, vector<2x8x128xf32>,
    return
  }
  func.func @transform_0(%arg0: i32) -> (i32, i32, i32) {
    %c0_i32 = arith.constant 0 : i32
    %c0_i32_0 = arith.constant 0 : i32
    %c0_i32_1 = arith.constant 0 : i32
    return %arg0, %c0_i32, %c0_i32_0 : i32, i32, i32
  }
  func.func @transform_1(%arg0: i32) -> (i32, i32, i32) {
    %c0_i32 = arith.constant 0 : i32
    %c0_i32_0 = arith.constant 0 : i32
    %c0_i32_1 = arith.constant 0 : i32
    return %arg0, %c0_i32, %c0_i32_0 : i32, i32, i32
  }
  func.func @transform_2(%arg0: i32) -> (i32, i32, i32) {
    %c0_i32 = arith.constant 0 : i32
    %c0_i32_0 = arith.constant 0 : i32
    %c0_i32_1 = arith.constant 0 : i32
    return %arg0, %c0_i32, %c0_i32_0 : i32, i32, i32
  }
  func.func @transform_3(%arg0: i32) -> (i32, i32) {
    %c0_i32 = arith.constant 0 : i32
    %c0_i32_0 = arith.constant 0 : i32
    %c0_i32_1 = arith.constant 0 : i32
    return %c0_i32, %c0_i32_0 : i32, i32
  }
  func.func @transform_4(%arg0: i32) -> (i32, i32) {
    %c0_i32 = arith.constant 0 : i32
    %c0_i32_0 = arith.constant 0 : i32
    %c0_i32_1 = arith.constant 0 : i32
    return %c0_i32, %c0_i32_0 : i32, i32
  }
  func.func @transform_5(%arg0: i32) -> (i32, i32) {
    %c0_i32 = arith.constant 0 : i32
    %c0_i32_0 = arith.constant 0 : i32
    %c0_i32_1 = arith.constant 0 : i32
    return %c0_i32, %c0_i32_0 : i32, i32
  }
  func.func @transform_6(%arg0: i32) -> (i32, i32) {
    %c0_i32 = arith.constant 0 : i32
    %c0_i32_0 = arith.constant 0 : i32
    %c0_i32_1 = arith.constant 0 : i32
    return %c0_i32, %c0_i32_0 : i32, i32
  }
  func.func @transform_7(%arg0: i32) -> (i32, i32) {
    %c0_i32 = arith.constant 0 : i32
    %c0_i32_0 = arith.constant 0 : i32
    %c0_i32_1 = arith.constant 0 : i32
    return %c0_i32, %c0_i32_0 : i32, i32
  }
  func.func @transform_8(%arg0: i32) -> (i32, i32) {
    %c0_i32 = arith.constant 0 : i32
    %c0_i32_0 = arith.constant 0 : i32
    %c0_i32_1 = arith.constant 0 : i32
    return %c0_i32, %c0_i32_0 : i32, i32
  }
  func.func @transform_9(%arg0: i32) -> (i32, i32, i32) {
    %c0_i32 = arith.constant 0 : i32
    %c0_i32_0 = arith.constant 0 : i32
    %c0_i32_1 = arith.constant 0 : i32
    return %arg0, %c0_i32, %c0_i32_0 : i32, i32, i32
  }
}

</mosaic_0001>

<bundles_post_ra>
// kernel: tpu_custom_call.1
= control target key start
LH: loop header
LB: loop body
LE: loop exit
PB: predicated region body
PF: predicated region fallthrough
CT: control target
= control target key end

     0   :  { %14 = vsyncpa [#allocation3], 0  ;;  %s1240_s0 = inlined_call_operand.hbm [shape: f32[2,8,32], index: 0, kind: input, shape index: {}]   ;;  %s1241_s1 = inlined_call_operand.hbm [shape: f32[2,8,32], index: 1, kind: input, shape index: {}]   ;;  %s1242_s2 = inlined_call_operand.hbm [shape: f32[2,8,32], index: 2, kind: input, shape index: {}]   ;;  %s1243_s3 = inlined_call_operand.hbm [shape: f32[32,128], index: 3, kind: input, shape index: {}]   ;;  %s1244_s4 = inlined_call_operand.vmem [shape: f32[1,128], index: 4, kind: input, shape index: {}]   ;;  %s1245_s5 = inlined_call_operand.hbm [shape: f32[32,128], index: 5, kind: input, shape index: {}]   ;;  %s1246_s6 = inlined_call_operand.vmem [shape: f32[1,128], index: 6, kind: input, shape index: {}]   ;;  %s1247_s7 = inlined_call_operand.hbm [shape: f32[32,128], index: 7, kind: input, shape index: {}]   ;;  %s1248_s8 = inlined_call_operand.vmem [shape: f32[1,128], index: 8, kind: input, shape index: {}]   ;;  %s1249_s9 = inlined_call_operand.hbm [shape: f32[2,8,128], index: 9, kind: output, shape index: {}]  }
   0x1   :  { %15 = vsyncpa [#allocation6], 0 }
   0x2   :  { %16 = vsyncpa [#allocation9], 0 }
   0x3   :  { %17 = vsyncpa [#allocation12], 0 }
   0x4   :  { %18 = vsyncpa [#allocation4], 0  ;;  %s1028_s30 = smov [#allocation5]   ;;  %s1029_s11 = smov [#allocation8]  }
   0x5   :  { %s36_s10 = sshll.u32 %s1028_s30, 4  ;;  %s60_s12 = sshll.u32 %s1029_s11, 4  ;;  %s37_s10 = int_to_ptr.vmem [resolvable:$true] %s36_s10  ;;  %s1089_s12 = int_to_ptr.vmem [resolvable:$true] %s60_s12 }
   0x6   :  { %s864_s15 = scalar_lea.hbm %s1241_s1, 256 }
   0x7   :  { %p865_p0 = scmp.ne.s32.totalorder %s1241_s1, %s864_s15  ;;  %p868_p1 = scmp.lt.u32.totalorder %s864_s15, %s1241_s1 }
   0x9   :  { %p870_p2 = pnand %p868_p1, %p865_p0 }
   0xb   :  { %873 = shalt.err (!%p870_p2)
}
   0xc   :  { %s874_s20 = scalar_lea.vmem %s37_s10, 256  ;;  %p879_p4 = scmp.lt.s32.totalorder %s37_s10, %s37_s10 }
   0xd   :  { %p875_p3 = scmp.ne.s32.totalorder %s37_s10, %s874_s20  ;;  %p880_p5 = scmp.lt.s32.totalorder %s874_s20, %s874_s20 }
   0xf   :  { %p881_p6 = por %p880_p5, %p879_p4 }
  0x11   :  { %p882_p7 = pnand %p881_p6, %p875_p3 }
  0x13   :  { %885 = shalt.err (!%p882_p7)
}
  0x14   :  { %s1030_s21 = smov 128   ;;  %s1031_s22 = smov 8  }
  0x15   :  { %42 = dma.hbm_to_vmem [thread:$0]  %s1241_s1, 256, %s37_s10, [#allocation6], %s1030_s21, %s1030_s21, %s1031_s22  }
  0x16   :  { %s886_s27 = scalar_lea.hbm %s1243_s3, 512 }
  0x17   :  { %p887_p8 = scmp.ne.s32.totalorder %s1243_s3, %s886_s27  ;;  %p890_p9 = scmp.lt.u32.totalorder %s886_s27, %s1243_s3 }
  0x19   :  { %p892_p10 = pnand %p890_p9, %p887_p8 }
  0x1b   :  { %895 = shalt.err (!%p892_p10)
}
  0x1c   :  { %s896_s13 = scalar_lea.vmem %s1089_s12, 512  ;;  %p901_p12 = scmp.lt.s32.totalorder %s1089_s12, %s1089_s12 }
  0x1d   :  { %p897_p11 = scmp.ne.s32.totalorder %s1089_s12, %s896_s13  ;;  %p902_p13 = scmp.lt.s32.totalorder %s896_s13, %s896_s13 }
  0x1f   :  { %p903_p0 = por %p902_p13, %p901_p12 }
  0x21   :  { %p904_p1 = pnand %p903_p0, %p897_p11 }
  0x23   :  { %907 = shalt.err (!%p904_p1)
}
  0x24   :  { %66 = dma.hbm_to_vmem [thread:$0]  %s1243_s3, 512, %s1089_s12, [#allocation9], %s1030_s21, %s1030_s21, %s1031_s22  }
  0x25   :  { %s1032_s14 = smov [#allocation2]   ;;  %s1033_s16 = smov [#allocation7]  }
  0x26   :  { %s24_s15 = sshll.u32 %s1032_s14, 4  ;;  %s48_s17 = sshll.u32 %s1033_s16, 4  ;;  %s25_s15 = int_to_ptr.vmem [resolvable:$true] %s24_s15  ;;  %s1126_s17 = int_to_ptr.vmem [resolvable:$true] %s48_s17 }
  0x27   :  { %s908_s20 = scalar_lea.hbm %s1240_s0, 256 }
  0x28   :  { %p909_p2 = scmp.ne.s32.totalorder %s1240_s0, %s908_s20  ;;  %p912_p3 = scmp.lt.u32.totalorder %s908_s20, %s1240_s0 }
  0x2a   :  { %p914_p4 = pnand %p912_p3, %p909_p2 }
  0x2c   :  { %917 = shalt.err (!%p914_p4)
}
  0x2d   :  { %s918_s3 = scalar_lea.vmem %s25_s15, 256  ;;  %p923_p6 = scmp.lt.s32.totalorder %s25_s15, %s25_s15 }
  0x2e   :  { %p919_p5 = scmp.ne.s32.totalorder %s25_s15, %s918_s3  ;;  %p924_p7 = scmp.lt.s32.totalorder %s918_s3, %s918_s3 }
  0x30   :  { %p925_p8 = por %p924_p7, %p923_p6 }
  0x32   :  { %p926_p9 = pnand %p925_p8, %p919_p5 }
  0x34   :  { %929 = shalt.err (!%p926_p9)
}
  0x35   :  { %30 = dma.hbm_to_vmem [thread:$0]  %s1240_s0, 256, %s25_s15, [#allocation3], %s1030_s21, %s1030_s21, %s1031_s22  }
  0x36   :  { %s930_s30 = scalar_lea.hbm %s1242_s2, 256 }
  0x37   :  { %p931_p10 = scmp.ne.s32.totalorder %s1242_s2, %s930_s30  ;;  %p934_p11 = scmp.lt.u32.totalorder %s930_s30, %s1242_s2 }
  0x39   :  { %p936_p12 = pnand %p934_p11, %p931_p10 }
  0x3b   :  { %939 = shalt.err (!%p936_p12)
}
  0x3c   :  { %s940_s14 = scalar_lea.vmem %s1126_s17, 256  ;;  %p945_p0 = scmp.lt.s32.totalorder %s1126_s17, %s1126_s17 }
  0x3d   :  { %p941_p13 = scmp.ne.s32.totalorder %s1126_s17, %s940_s14  ;;  %p946_p1 = scmp.lt.s32.totalorder %s940_s14, %s940_s14 }
  0x3f   :  { %p947_p2 = por %p946_p1, %p945_p0 }
  0x41   :  { %p948_p3 = pnand %p947_p2, %p941_p13 }
  0x43   :  { %951 = shalt.err (!%p948_p3)
}
  0x44   :  { %54 = dma.hbm_to_vmem [thread:$0]  %s1242_s2, 256, %s1126_s17, [#allocation6], %s1030_s21, %s1030_s21, %s1031_s22  }
  0x45   :  { %s1034_s16 = smov [#allocation10]   ;;  %s1035_s19 = smov [#allocation11]  }
  0x46   :  { %s74_s18 = sshll.u32 %s1034_s16, 4  ;;  %s88_s20 = sshll.u32 %s1035_s19, 4  ;;  %s75_s18 = int_to_ptr.vmem [resolvable:$true] %s74_s18  ;;  %s1163_s20 = int_to_ptr.vmem [resolvable:$true] %s88_s20 }
  0x47   :  { %s952_s25 = scalar_lea.hbm %s1245_s5, 512 }
  0x48   :  { %p953_p4 = scmp.ne.s32.totalorder %s1245_s5, %s952_s25  ;;  %p956_p5 = scmp.lt.u32.totalorder %s952_s25, %s1245_s5 }
  0x4a   :  { %p958_p6 = pnand %p956_p5, %p953_p4 }
  0x4c   :  { %961 = shalt.err (!%p958_p6)
}
  0x4d   :  { %s962_s2 = scalar_lea.vmem %s75_s18, 512  ;;  %p967_p8 = scmp.lt.s32.totalorder %s75_s18, %s75_s18 }
  0x4e   :  { %p963_p7 = scmp.ne.s32.totalorder %s75_s18, %s962_s2  ;;  %p968_p9 = scmp.lt.s32.totalorder %s962_s2, %s962_s2 }
  0x50   :  { %p969_p10 = por %p968_p9, %p967_p8 }
  0x52   :  { %p970_p11 = pnand %p969_p10, %p963_p7 }
  0x54   :  { %973 = shalt.err (!%p970_p11)
}
  0x55   :  { %80 = dma.hbm_to_vmem [thread:$0]  %s1245_s5, 512, %s75_s18, [#allocation9], %s1030_s21, %s1030_s21, %s1031_s22  }
  0x56   :  { %s974_s11 = scalar_lea.hbm %s1247_s7, 512 }
  0x57   :  { %p975_p12 = scmp.ne.s32.totalorder %s1247_s7, %s974_s11  ;;  %p978_p13 = scmp.lt.u32.totalorder %s974_s11, %s1247_s7 }
  0x59   :  { %p980_p0 = pnand %p978_p13, %p975_p12 }
  0x5b   :  { %983 = shalt.err (!%p980_p0)
}
  0x5c   :  { %s984_s0 = scalar_lea.vmem %s1163_s20, 512  ;;  %p989_p2 = scmp.lt.s32.totalorder %s1163_s20, %s1163_s20 }
  0x5d   :  { %p985_p1 = scmp.ne.s32.totalorder %s1163_s20, %s984_s0  ;;  %p990_p3 = scmp.lt.s32.totalorder %s984_s0, %s984_s0 }
  0x5f   :  { %p991_p4 = por %p990_p3, %p989_p2 }
  0x61   :  { %p992_p5 = pnand %p991_p4, %p985_p1 }
  0x63   :  { %995 = shalt.err (!%p992_p5)
}
  0x64   :  { %94 = dma.hbm_to_vmem [thread:$0]  %s1247_s7, 512, %s1163_s20, [#allocation12], %s1030_s21, %s1030_s21, %s1031_s22  }
  0x65   :  { %1018 = dma.done.wait [#allocation3], 256  }
  0x66   :  { %1019 = vsyncadd [#allocation3], 4294967040 }
  0x67   :  { %1020 = dma.done.wait [#allocation6], 512  }
  0x68   :  { %1021 = vsyncadd [#allocation6], 4294966784 }
  0x69   :  { %1022 = dma.done.wait [#allocation9], 1024  }
  0x6a   :  { %1023 = vsyncadd [#allocation9], 4294966272 }
  0x6b   :  { %1024 = dma.done.wait [#allocation12], 512  }
  0x6c   :  { %1025 = vsyncadd [#allocation12], 4294966784  ;;  %vm132_vm0 = vcmask 261120   ;;  %v121_v0 = vld [vmem:[#allocation8] sm:$0xff]  ;;  %v122_v1 = vld [vmem:[#allocation8 + $0x8] sm:$0xff]  ;;  %v1036_v24 = vmov 0.0  }
  0x6d   :  { %v123_v2 = vld [vmem:[#allocation8 + $0x10] sm:$0xff]  ;;  %v821_v3 = vpack.c.bf16 %v122_v1, %v121_v0  ;;  %v124_v4 = vld [vmem:[#allocation8 + $0x18] sm:$0xff]  ;;  %v306_v7 = vld [vmem:[#allocation11] sm:$0xff]  ;;  %vm1037_vm1 = vmmov 0   ;;  %vm540_vm2 = vcmask 64512  }
  0x6e   :  { %v115_v5 = vld [vmem:[#allocation2] sm:$0xff]  ;;  %v825_v6 = vpack.c.bf16 %v124_v4, %v123_v2  ;;  %v307_v8 = vld [vmem:[#allocation11 + $0x8] sm:$0xff]  ;;  %v214_v9 = vld [vmem:[#allocation10] sm:$0xff] }
  0x6f   :  { %776 = vmatprep.mubr.msk.f32.mxu0 %vm132_vm0, %v115_v5  ;;  %822 = vmatprep.subr.bf16.mxu0 %v821_v3  ;;  %v215_v10 = vld [vmem:[#allocation10 + $0x8] sm:$0xff]  ;;  %v216_v11 = vld [vmem:[#allocation10 + $0x10] sm:$0xff]  ;;  %v837_v12 = vpack.c.bf16 %v307_v8, %v306_v7  ;;  %v217_v14 = vld [vmem:[#allocation10 + $0x18] sm:$0xff] }
  0x70   :  { %824 = vmatpush3.bf16.msra.mxu0 %v821_v3  ;;  %v829_v13 = vpack.c.bf16 %v215_v10, %v214_v9  ;;  %v308_v15 = vld [vmem:[#allocation11 + $0x10] sm:$0xff]  ;;  %v309_v16 = vld [vmem:[#allocation11 + $0x18] sm:$0xff]  ;;  %v833_v17 = vpack.c.bf16 %v217_v14, %v216_v11  ;;  %v117_v22 = vld [vmem:[#allocation5] sm:$0xff] }
  0x71   :  { %826 = vmatprep.subr.bf16.mxu0 %v825_v6  ;;  %v116_v18 = vld [vmem:[#allocation2 + $0x8] sm:$0xff]  ;;  %v841_v19 = vpack.c.bf16 %v309_v16, %v308_v15  ;;  %v119_v20 = vld [vmem:[#allocation7] sm:$0xff]  ;;  %v118_v23 = vld [vmem:[#allocation5 + $0x8] sm:$0xff]  ;;  %787 = vmatprep.mubr.msk.f32.mxu1 %vm132_vm0, %v117_v22 }
  0x72   :  { %830 = vmatprep.subr.bf16.mxu1 %v829_v13  ;;  %v120_v21 = vld [vmem:[#allocation7 + $0x8] sm:$0xff]  ;;  %v731_v25 = vld [vmem:[%s1244_s4] ss:$0 sm:$0xff] }
  0x73   :  { %832 = vmatpush3.bf16.msra.mxu1 %v829_v13  ;;  %v737_v29 = vld [vmem:[%s1248_s8] ss:$0 sm:$0xff] }
  0x74   :  { %828 = vmatpush3.bf16.msra.mxu0 %v825_v6  ;;  %834 = vmatprep.subr.bf16.mxu1 %v833_v17  ;;  %v734_v35 = vld [vmem:[%s1246_s6] ss:$0 sm:$0xff]  ;;  %s1038_s6 = smov [#allocation13]  }
  0x75   :  { %838 = vmatprep.subr.bf16.mxu0 %v837_v12  ;;  %s716_s8 = sshll.u32 %s1038_s6, 4  ;;  %s717_s8 = int_to_ptr.vmem [resolvable:$true] %s716_s8 }
  0x76   :  { %s996_s23 = scalar_lea.vmem %s717_s8, 256  ;;  %p1001_p7 = scmp.lt.s32.totalorder %s717_s8, %s717_s8 }
  0x77   :  { %777 = vmatmul.mubr.msk.f32.vlgmr.msra.gmra.mrb[0].mxu0 %vm132_vm0, %v116_v18  ;;  %836 = vmatpush3.bf16.msra.mxu1 %v833_v17  ;;  %p997_p6 = scmp.ne.s32.totalorder %s717_s8, %s996_s23  ;;  %p1002_p8 = scmp.lt.s32.totalorder %s996_s23, %s996_s23 }
  0x78   :  { %840 = vmatpush3.bf16.msra.mxu0 %v837_v12  ;;  %798 = vmatprep.mubr.msk.f32.mxu0 %vm132_vm0, %v119_v20 }
  0x79   :  { %842 = vmatprep.subr.bf16.mxu0 %v841_v19  ;;  %801 = vmatprep.subr.mxu1 %v1036_v24  ;;  %p1003_p9 = por %p1002_p8, %p1001_p7 }
  0x7a   :  { %788 = vmatmul.mubr.msk.f32.vlgmr.msra.gmra.mrb[0].mxu1 %vm132_vm0, %v118_v23 }
  0x7b   :  { %803 = vmatprep.mubr.msk.f32.mxu1 %vm1037_vm1, %v1036_v24  ;;  %p1004_p10 = pnand %p1003_p9, %p997_p6 }
  0x7c   :  { %844 = vmatpush3.bf16.msra.mxu0 %v841_v19 }
  0x7d   :  { %811 = vmatprep.subr.mxu0 %v1036_v24 }
  0x7f   :  { %799 = vmatmul.mubr.msk.f32.vlgmr.msra.gmra.mrb[2].mxu0 %vm132_vm0, %v120_v21 }
  0x80   :  { %813 = vmatprep.mubr.msk.f32.mxu0 %vm1037_vm1, %v1036_v24 }
 0x14a   :  { %v778_v26 = vpop.f32.mrb[0].mxu0 }
 0x14b   :  { %v205_v27 = vpop.f32.mrb[1].mxu0  ;;  %v211_v33 = vadd.f32 %v778_v26, %v731_v25 }
 0x14c   :  { %v206_v28 = vadd.f32 %v731_v25, %v205_v27 }
 0x14d   :  { %v789_v36 = vpop.f32.mrb[0].mxu1 }
 0x14e   :  { %802 = vmatpush3.xpose.msra.mxu1 %v206_v28  ;;  %v303_v37 = vadd.f32 %v789_v36, %v734_v35  ;;  %v297_v38 = vpop.f32.mrb[1].mxu1 }
 0x14f   :  { %806 = vmatprep.subr.mxu1 %v1036_v24  ;;  %v298_v39 = vadd.f32 %v734_v35, %v297_v38 }
 0x151   :  { %812 = vmatpush3.msra.mxu0 %v298_v39 }
 0x152   :  { %v800_v30 = vpop.f32.mrb[2].mxu0 }
 0x153   :  { %v389_v31 = vpop.f32.mrb[3].mxu0  ;;  %v395_v34 = vadd.f32 %v800_v30, %v737_v29 }
 0x154   :  { %v390_v32 = vadd.f32 %v737_v29, %v389_v31 }
 0x156   :  { %804 = vmatmul.mubr.f32.vlgmr.msra.gmra.mrb[2].mxu1 %v390_v32 }
 0x157   :  { %807 = vmatpush3.xpose.msra.mxu1 %v211_v33  ;;  %808 = vmatprep.mubr.msk.f32.mxu1 %vm1037_vm1, %v1036_v24 }
 0x158   :  { %816 = vmatprep.subr.mxu1 %v1036_v24 }
 0x15a   :  { %809 = vmatmul.mubr.f32.vlgmr.msra.gmra.mrb[4].mxu1 %v395_v34 }
 0x15b   :  { %818 = vmatprep.mubr.msk.f32.mxu1 %vm1037_vm1, %v1036_v24  ;;  %817 = vmatpush3.msra.mxu1 %v303_v37 }
 0x229   :  { %v464_v40 = vpop.f32.mrb[2].mxu1 }
 0x22a   :  { %v538_v41 = vmul.f32 0.35355338, %v464_v40  ;;  %v805_v42 = vpop.f32.mrb[3].mxu1 }
 0x22c   :  { %v541_v43 = vsel %vm540_vm2, %v538_v41, -inf }
 0x22d   :  { %542 = vmax.xlane.f32.xlu0 %v541_v43  ;;  %v534_v44 = vpop.f32.mrb[4].mxu1 }
 0x22e   :  { %v539_v45 = vmul.f32 0.35355338, %v534_v44  ;;  %v810_v46 = vpop.f32.mrb[5].mxu1 }
 0x230   :  { %v544_v47 = vsel %vm540_vm2, %v539_v45, -inf }
 0x231   :  { %545 = vmax.xlane.f32.xlu0 %v544_v47 }
 0x2ba   :  { %v543_v48 = vpop.xlane.xlu0 %542 }
 0x2bb   :  { %v547_v49 = vsub.f32 %v538_v41, %v543_v48 }
 0x2bd   :  { %v549_v50 = vmul.f32 1.442695, %v547_v49 }
 0x2be   :  { %v546_v51 = vpop.xlane.xlu0 %545 }
 0x2bf   :  { %856 = vpow2.f32 %v549_v50  ;;  %v548_v52 = vsub.f32 %v539_v45, %v546_v51 }
 0x2c1   :  { %v551_v53 = vmul.f32 1.442695, %v548_v52 }
 0x2c3   :  { %858 = vpow2.f32 %v551_v53 }
 0x2c9   :  { %v857_v54 = vpop.eup %856 }
 0x2ca   :  { %v553_v55 = vsel %vm540_vm2, %v857_v54, 0.0 }
 0x2cb   :  { %554 = vadd.xlane.f32.xlu1 %v553_v55 }
 0x2cd   :  { %v859_v56 = vpop.eup %858 }
 0x2ce   :  { %v556_v57 = vsel %vm540_vm2, %v859_v56, 0.0 }
 0x2cf   :  { %557 = vadd.xlane.f32.xlu1 %v556_v57 }
 0x358   :  { %v555_v58 = vpop.xlane.xlu1 %554 }
 0x359   :  { %860 = vrcp.f32 %v555_v58 }
 0x35c   :  { %v558_v59 = vpop.xlane.xlu1 %557 }
 0x35d   :  { %862 = vrcp.f32 %v558_v59 }
 0x363   :  { %v861_v60 = vpop.eup %860 }
 0x364   :  { %v561_v61 = vmul.f32 %v861_v60, %v857_v54 }
 0x366   :  { %814 = vmatmul.mubr.msk.f32.vlgmr.msra.gmra.mrb[4].mxu0 %vm540_vm2, %v561_v61 }
 0x367   :  { %v863_v62 = vpop.eup %862 }
 0x368   :  { %v562_v63 = vmul.f32 %v863_v62, %v859_v56 }
 0x36a   :  { %819 = vmatmul.mubr.msk.f32.vlgmr.msra.gmra.mrb[6].mxu1 %vm540_vm2, %v562_v63 }
 0x439   :  { %v632_v0 = vpop.f32.mrb[4].mxu0 }
 0x43a   :  { %709 = vst [vmem:[#allocation13] sm:$0xff] %v632_v0  ;;  %v815_v1 = vpop.f32.mrb[5].mxu0 }
 0x43d   :  { %v705_v2 = vpop.f32.mrb[6].mxu1 }
 0x43e   :  { %710 = vst [vmem:[#allocation13 + $0x8] sm:$0xff] %v705_v2  ;;  %v820_v3 = vpop.f32.mrb[7].mxu1 }
 0x43f   :  { %1007 = shalt.err (!%p1004_p10)
}
 0x440   :  { %s1008_s26 = scalar_lea.hbm %s1249_s9, 256 }
 0x441   :  { %p1009_p11 = scmp.ne.s32.totalorder %s1249_s9, %s1008_s26  ;;  %p1012_p12 = scmp.lt.u32.totalorder %s1008_s26, %s1249_s9 }
 0x443   :  { %p1014_p13 = pnand %p1012_p12, %p1009_p11 }
 0x445   :  { %1017 = shalt.err (!%p1014_p13)
}
 0x446   :  { %722 = dma.vmem_to_hbm [thread:$0]  %s717_s8, 256, %s1249_s9, [#allocation4], %s1030_s21, %s1030_s21, %s1031_s22  }
 0x447   :  { %1026 = dma.done.wait [#allocation4], 256  }
 0x448   :  { %1027 = vsyncadd [#allocation4], 4294967040 }
 0x449   :  { %726 = vsyncpa [#allocation3], 1 }
 0x44a   :  { %727 = vsyncpa [#allocation6], 1 }
 0x44b   :  { %728 = vsyncpa [#allocation9], 1 }
 0x44c   :  { %729 = vsyncpa [#allocation12], 1 }
 0x44d   :  { %730 = vsyncpa [#allocation4], 1 }

</bundles_post_ra>
